<compile_context>
chip_gen: v7x
topology: tpu7x:2x2x1
jax: 0.10.0
libtpu: 0.0.40
codegen_flags: <defaults>
</compile_context>

<pallas_src>
import math

import jax
import jax.numpy as jnp
from jax.experimental import pallas as pl
from jax.experimental.pallas import tpu as pltpu


def _attention_kernel(xt_ref, wat_ref, u_ref, o_ref):
    """Whole-array kernel — everything fits trivially in VMEM at these sizes.

    xt_ref : (B*T, C)  x with tokens on sublanes, channels on lanes
             xt[b*T + t, c] == x[b, c, t]
    wat_ref: (C, C)    Wa transposed (so the kernel computes x^T @ Wa^T)
    u_ref  : (C, 1)    context/query vector as a column
    o_ref  : (B, C)    output
    """
    B, C = o_ref.shape
    T = xt_ref.shape[0] // B

    xt = xt_ref[...].astype(jnp.float32)                       # (B*T, C)

    # v^T = tanh(x^T @ Wa^T): ONE batched MXU matmul for all B batches.
    v = jnp.tanh(
        jnp.dot(xt, wat_ref[...], preferred_element_type=jnp.float32)
    )                                                           # (B*T, C)

    # scores = v^T @ u : one MXU matvec for all batches.
    s = jnp.dot(v, u_ref[...], preferred_element_type=jnp.float32)  # (B*T, 1)

    # Per-batch softmax over T.  (B*T, 1) -> (B, T, 1) only regroups sublane
    # tiles (T == 8 here), so it is layout-free.
    s3 = s.reshape(B, T, 1)
    m = jnp.max(s3, axis=1, keepdims=True)                      # (B, 1, 1)
    e = jnp.exp(s3 - m)                                         # (B, T, 1)
    denom = jnp.sum(e, axis=1, keepdims=True)                   # (B, 1, 1)
    p = e * pl.reciprocal(denom, approx=True)                   # EUP divide

    # out[b, c] = sum_t x[b, c, t] * p[b, t]; at T=8 a VPU multiply + sublane
    # reduce is neutral vs. MXU (fold into a matmul only once T grows).
    x3 = xt.reshape(B, T, C)                                    # free regroup
    out = jnp.sum(x3 * p, axis=1)                               # (B, C)

    # Single full-tile, lane-dense store (no per-row masked stores).
    o_ref[...] = out.astype(o_ref.dtype)


def attention_with_context(x, wa, u):
    """x: (B, C, T), wa: (C, C), u: (C,) -> (B, C)."""
    B, C, T = x.shape
    # Layout plumbing outside the kernel (cheap XLA ops):
    #  - tokens on sublanes, channels on the lane axis (C is the densest axis
    #    available when T is tiny),
    #  - Wa pre-transposed so the kernel's matmul is xt @ Wa^T,
    #  - u as a (C, 1) column for an MXU matvec.
    xt = jnp.transpose(x, (0, 2, 1)).reshape(B * T, C)
    wat = wa.T
    u_col = u.reshape(C, 1)

    return pl.pallas_call(
        _attention_kernel,
        out_shape=jax.ShapeDtypeStruct((B, C), x.dtype),
        in_specs=[
            pl.BlockSpec(memory_space=pltpu.MemorySpace.VMEM),
            pl.BlockSpec(memory_space=pltpu.MemorySpace.VMEM),
            pl.BlockSpec(memory_space=pltpu.MemorySpace.VMEM),
        ],
        out_specs=pl.BlockSpec(memory_space=pltpu.MemorySpace.VMEM),
    )(xt, wat, u_col)


def attention_with_context_ref(x, wa, u):
    """Pure-JAX reference mirroring the PyTorch forward exactly."""
    v = jnp.tanh(jnp.einsum("cd,bdt->bct", wa, x))
    s = jnp.einsum("c,bct->bt", u, v)
    p = jax.nn.softmax(s, axis=1)
    return jnp.sum(x * p[:, None, :], axis=2)


if __name__ == "__main__":
    B, C, T = 2, 32, 8                         # batch=2, in_channels=32, seq=8
    key = jax.random.PRNGKey(0)
    kx, kw, ku = jax.random.split(key, 3)

    x = jax.random.normal(kx, (B, C, T), dtype=jnp.float32)

    # Deterministic parameter init matching nn.init.xavier_uniform_:
    wa_bound = math.sqrt(6.0 / (C + C))                    # Wa is (C, C)
    wa = jax.random.uniform(kw, (C, C), jnp.float32, -wa_bound, wa_bound)
    u_bound = math.sqrt(6.0 / (C + 1))                     # xavier on u.unsqueeze(1): (C, 1)
    u = jax.random.uniform(ku, (C,), jnp.float32, -u_bound, u_bound)

    out = attention_with_context(x, wa, u)
    jax.block_until_ready(out)

    ref = attention_with_context_ref(x, wa, u)
    assert out.shape == (B, C)
    # Tolerance accounts for the EUP approximate reciprocal in the softmax
    # normalization (rel. err ~1e-4); everything else is exact f32.
    assert jnp.allclose(out, ref, atol=2e-3, rtol=2e-3), "kernel/reference mismatch"
    print("KERNEL_OK")
</pallas_src>

<mosaic_0001>
module attributes {stable_mosaic.version = 11 : i64} {
  func.func @_attention_kernel(%arg0: memref<16x32xf32, #tpu.memory_space<vmem>>, %arg1: memref<32x32xf32, #tpu.memory_space<vmem>>, %arg2: memref<32x1xf32, #tpu.memory_space<vmem>>, %arg3: memref<2x32xf32, #tpu.memory_space<vmem>>) attributes {dimension_semantics = [], scalar_prefetch = 0 : i64, scratch_operands = 0 : i64, tpu.core_type = #tpu.core_type<tc>} {
    %c0 = arith.constant 0 : index
    %c0_0 = arith.constant 0 : index
    %0 = vector.load %arg0[%c0, %c0_0] : memref<16x32xf32, #tpu.memory_space<vmem>>, vector<16x32xf32>
    %c0_1 = arith.constant 0 : index
    %c0_2 = arith.constant 0 : index
    %1 = vector.load %arg1[%c0_1, %c0_2] : memref<32x32xf32, #tpu.memory_space<vmem>>, vector<32x32xf32>
    %cst = arith.constant dense<0.000000e+00> : vector<16x32xf32>
    %2 = tpu.matmul %0, %1, %cst {dimension_numbers = #tpu.dot_dimension_numbers<[1], [0], [0], [1], [0, 0, 1, 1], [], []>} : vector<16x32xf32>, vector<32x32xf32>, vector<16x32xf32> -> vector<16x32xf32>
    %3 = math.tanh %2 : vector<16x32xf32>
    %c0_3 = arith.constant 0 : index
    %c0_4 = arith.constant 0 : index
    %4 = vector.load %arg2[%c0_3, %c0_4] : memref<32x1xf32, #tpu.memory_space<vmem>>, vector<32x1xf32>
    %cst_5 = arith.constant dense<0.000000e+00> : vector<16x1xf32>
    %5 = tpu.matmul %3, %4, %cst_5 {dimension_numbers = #tpu.dot_dimension_numbers<[1], [0], [0], [1], [0, 0, 1, 1], [], []>} : vector<16x32xf32>, vector<32x1xf32>, vector<16x1xf32> -> vector<16x1xf32>
    %6 = vector.shape_cast %5 : vector<16x1xf32> to vector<2x8x1xf32>
    %cst_6 = arith.constant dense<0xFF800000> : vector<2x1xf32>
    %7 = vector.multi_reduction <maximumf>, %6, %cst_6 [1] : vector<2x8x1xf32> to vector<2x1xf32>
    %8 = vector.shape_cast %7 : vector<2x1xf32> to vector<2x1x1xf32>
    %9 = vector.broadcast %8 : vector<2x1x1xf32> to vector<2x8x1xf32>
    %10 = arith.subf %6, %9 : vector<2x8x1xf32>
    %11 = math.exp %10 : vector<2x8x1xf32>
    %cst_7 = arith.constant dense<0.000000e+00> : vector<2x1xf32>
    %12 = vector.multi_reduction <add>, %11, %cst_7 [1] : vector<2x8x1xf32> to vector<2x1xf32>
    %13 = vector.shape_cast %12 : vector<2x1xf32> to vector<2x1x1xf32>
    %14 = tpu.reciprocal %13 {approx = true} : vector<2x1x1xf32> -> vector<2x1x1xf32>
    %15 = vector.broadcast %14 : vector<2x1x1xf32> to vector<2x8x1xf32>
    %16 = arith.mulf %11, %15 : vector<2x8x1xf32>
    %17 = vector.shape_cast %0 : vector<16x32xf32> to vector<2x8x32xf32>
    %18 = vector.broadcast %16 : vector<2x8x1xf32> to vector<2x8x32xf32>
    %19 = arith.mulf %17, %18 : vector<2x8x32xf32>
    %cst_8 = arith.constant dense<0.000000e+00> : vector<2x32xf32>
    %20 = vector.multi_reduction <add>, %19, %cst_8 [1] : vector<2x8x32xf32> to vector<2x32xf32>
    %c0_9 = arith.constant 0 : index
    %c0_10 = arith.constant 0 : index
    %21 = vector.load %arg3[%c0_9, %c0_10] : memref<2x32xf32, #tpu.memory_space<vmem>>, vector<2x32xf32>
    tpu.vector_store %arg3[%c0_9, %c0_10], %20 {strides = array<i32>} : memref<2x32xf32, #tpu.memory_space<vmem>>, vector<2x32xf32>,
    return
  }
}

</mosaic_0001>

<bundles_post_ra>
// kernel: tpu_custom_call.1
= control target key start
LH: loop header
LB: loop body
LE: loop exit
PB: predicated region body
PF: predicated region fallthrough
CT: control target
= control target key end

     0   :  { %8 = vsyncpa [#allocation3], 0  ;;  %s502_s0 = inlined_call_operand.hbm [shape: f32[16,32], index: 0, kind: input, shape index: {}]   ;;  %s503_s1 = inlined_call_operand.vmem [shape: f32[32,32], index: 1, kind: input, shape index: {}]   ;;  %s504_s2 = inlined_call_operand.vmem [shape: f32[32,1], index: 2, kind: input, shape index: {}]   ;;  %s505_s3 = inlined_call_operand.hbm [shape: f32[2,32], index: 3, kind: output, shape index: {}]  }
   0x1   :  { %9 = vsyncpa [#allocation4], 0  ;;  %s411_s12 = smov [#allocation2]   ;;  %s363_s16 = scalar_lea.hbm %s502_s0, 256 }
   0x2   :  { %s15_s13 = sshll.u32 %s411_s12, 4  ;;  %p364_p0 = scmp.ne.s32.totalorder %s502_s0, %s363_s16  ;;  %s16_s13 = int_to_ptr.vmem [resolvable:$true] %s15_s13 }
   0x3   :  { %p367_p1 = scmp.lt.u32.totalorder %s363_s16, %s502_s0 }
   0x5   :  { %p369_p2 = pnand %p367_p1, %p364_p0 }
   0x7   :  { %372 = shalt.err (!%p369_p2)
}
   0x8   :  { %s373_s21 = scalar_lea.vmem %s16_s13, 256  ;;  %p378_p4 = scmp.lt.s32.totalorder %s16_s13, %s16_s13 }
   0x9   :  { %p374_p3 = scmp.ne.s32.totalorder %s16_s13, %s373_s21  ;;  %p379_p5 = scmp.lt.s32.totalorder %s373_s21, %s373_s21 }
   0xb   :  { %p380_p6 = por %p379_p5, %p378_p4 }
   0xd   :  { %p381_p7 = pnand %p380_p6, %p374_p3 }
   0xf   :  { %384 = shalt.err (!%p381_p7)
}
  0x10   :  { %s412_s22 = smov 128   ;;  %s413_s23 = smov 8  }
  0x11   :  { %21 = dma.hbm_to_vmem [thread:$0]  %s502_s0, 256, %s16_s13, [#allocation3], %s412_s22, %s412_s22, %s413_s23  }
  0x12   :  { %407 = dma.done.wait [#allocation3], 256  }
  0x13   :  { %408 = vsyncadd [#allocation3], 4294967040  ;;  %vm35_vm0 = vcmask 261120   ;;  %v31_v0 = vld [vmem:[%s503_s1] sm:$0xff]  ;;  %v32_v1 = vld [vmem:[%s503_s1 + $0x8] sm:$0xff]  ;;  %v414_v18 = vmov 0  }
  0x14   :  { %v33_v2 = vld [vmem:[%s503_s1 + $0x10] sm:$0xff]  ;;  %v329_v3 = vpack.c.bf16 %v32_v1, %v31_v0  ;;  %v34_v4 = vld [vmem:[%s503_s1 + $0x18] sm:$0xff]  ;;  %v460_v5 = vld [vmem:[#allocation2] sm:$0xff]  ;;  %350 = vset.pattern.permute.xlu0 %v414_v18  ;;  %vm204_vm1 = vcmask 7168   ;;  %vm271_vm2 = vcmask 1041409   ;;  %vm274_vm3 = vcmask 254976  }
  0x15   :  { %v333_v6 = vpack.c.bf16 %v34_v4, %v33_v2  ;;  %315 = vmatprep.mubr.msk.f32.mxu0 %vm35_vm0, %v460_v5  ;;  %v464_v7 = vld [vmem:[#allocation2 + $0x8] sm:$0xff]  ;;  %v119_v8 = vld [vmem:[%s504_s2] sm:$0xff]  ;;  %v121_v10 = vld [vmem:[%s504_s2 + $0x10] sm:$0xff] }
  0x16   :  { %330 = vmatprep.subr.bf16.mxu0 %v329_v3  ;;  %v120_v9 = vld [vmem:[%s504_s2 + $0x8] sm:$0xff]  ;;  %v122_v12 = vld [vmem:[%s504_s2 + $0x18] sm:$0xff]  ;;  %s415_s2 = smov [#allocation5]  }
  0x17   :  { %332 = vmatpush3.bf16.msra.mxu0 %v329_v3  ;;  %v337_v11 = vpack.c.bf16 %v120_v9, %v119_v8  ;;  %v341_v13 = vpack.c.bf16 %v122_v12, %v121_v10  ;;  %s282_s13 = sshll.u32 %s415_s2, 4  ;;  %s283_s13 = int_to_ptr.vmem [resolvable:$true] %s282_s13 }
  0x18   :  { %334 = vmatprep.subr.bf16.mxu0 %v333_v6  ;;  %s385_s14 = scalar_lea.vmem %s283_s13, 32  ;;  %p390_p9 = scmp.lt.s32.totalorder %s283_s13, %s283_s13 }
  0x19   :  { %338 = vmatprep.subr.bf16.mxu1 %v337_v11  ;;  %p386_p8 = scmp.ne.s32.totalorder %s283_s13, %s385_s14  ;;  %p391_p10 = scmp.lt.s32.totalorder %s385_s14, %s385_s14 }
  0x1a   :  { %340 = vmatpush3.bf16.msra.mxu1 %v337_v11 }
  0x1b   :  { %336 = vmatpush3.bf16.msra.mxu0 %v333_v6  ;;  %342 = vmatprep.subr.bf16.mxu1 %v341_v13  ;;  %p392_p11 = por %p391_p10, %p390_p9 }
  0x1d   :  { %p393_p12 = pnand %p392_p11, %p386_p8 }
  0x1e   :  { %316 = vmatmul.mubr.msk.f32.vlgmr.msra.gmra.mrb[0].mxu0 %vm35_vm0, %v464_v7  ;;  %344 = vmatpush3.bf16.msra.mxu1 %v341_v13 }
  0xf1   :  { %v317_v14 = vpop.f32.mrb[0].mxu0 }
  0xf2   :  { %v108_v15 = vpop.f32.mrb[1].mxu0 }
  0xf3   :  { %351 = vtanh.f32 %v108_v15 }
  0xf4   :  { %353 = vtanh.f32 %v317_v14 }
  0xfd   :  { %v352_v16 = vpop.eup %351 }
  0xfe   :  { %v354_v17 = vpop.eup %353  ;;  %326 = vmatprep.mubr.msk.f32.mxu1 %vm35_vm0, %v352_v16 }
  0xff   :  { %327 = vmatmul.mubr.msk.f32.vlgmr.msra.gmra.mrb[0].mxu1 %vm35_vm0, %v354_v17 }
 0x1d2   :  { %v328_v19 = vpop.f32.mrb[0].mxu1 }
 0x1d3   :  { %v212_v20 = vsel %vm204_vm1, %v328_v19, -inf  ;;  %v195_v21 = vpop.f32.mrb[1].mxu1 }
 0x1d4   :  { %v213_v22 = vrot.slane %v212_v20, 4  ;;  %v205_v23 = vsel %vm204_vm1, %v195_v21, -inf }
 0x1d5   :  { %v206_v24 = vrot.slane %v205_v23, 4 }
 0x1d6   :  { %v214_v25 = vmax.f32 %v212_v20, %v213_v22 }
 0x1d7   :  { %v207_v26 = vmax.f32 %v205_v23, %v206_v24 }
 0x1d8   :  { %v215_v27 = vrot.slane %v214_v25, 2 }
 0x1d9   :  { %v208_v28 = vrot.slane %v207_v26, 2 }
 0x1da   :  { %v216_v29 = vmax.f32 %v214_v25, %v215_v27 }
 0x1db   :  { %v209_v30 = vmax.f32 %v207_v26, %v208_v28 }
 0x1dc   :  { %v217_v31 = vrot.slane %v216_v29, 1 }
 0x1dd   :  { %v210_v32 = vrot.slane %v209_v30, 1 }
 0x1de   :  { %v218_v33 = vmax.f32 %v216_v29, %v217_v31 }
 0x1df   :  { %v211_v34 = vmax.f32 %v209_v30, %v210_v32 }
 0x1e0   :  { %v220_v35 = vsub.f32 %v328_v19, %v218_v33 }
 0x1e1   :  { %v219_v36 = vsub.f32 %v195_v21, %v211_v34 }
 0x1e2   :  { %v223_v37 = vmul.f32 1.442695, %v220_v35 }
 0x1e3   :  { %v221_v38 = vmul.f32 1.442695, %v219_v36 }
 0x1e4   :  { %355 = vpow2.f32 %v223_v37 }
 0x1e5   :  { %357 = vpow2.f32 %v221_v38 }
 0x1ee   :  { %v356_v39 = vpop.eup %355 }
 0x1ef   :  { %v358_v40 = vpop.eup %357  ;;  %v232_v41 = vsel %vm204_vm1, %v356_v39, 0.0 }
 0x1f0   :  { %v233_v42 = vrot.slane %v232_v41, 4  ;;  %v225_v43 = vsel %vm204_vm1, %v358_v40, 0.0 }
 0x1f1   :  { %v226_v44 = vrot.slane %v225_v43, 4 }
 0x1f2   :  { %v234_v45 = vadd.f32 %v233_v42, %v232_v41 }
 0x1f3   :  { %v227_v46 = vadd.f32 %v226_v44, %v225_v43 }
 0x1f4   :  { %v235_v47 = vrot.slane %v234_v45, 2 }
 0x1f5   :  { %v228_v48 = vrot.slane %v227_v46, 2 }
 0x1f6   :  { %v236_v49 = vadd.f32 %v235_v47, %v234_v45 }
 0x1f7   :  { %v229_v50 = vadd.f32 %v228_v48, %v227_v46 }
 0x1f8   :  { %v237_v51 = vrot.slane %v236_v49, 1 }
 0x1f9   :  { %v230_v52 = vrot.slane %v229_v50, 1 }
 0x1fa   :  { %v238_v53 = vadd.f32 %v237_v51, %v236_v49 }
 0x1fb   :  { %v231_v54 = vadd.f32 %v230_v52, %v229_v50 }
 0x1fd   :  { %359 = vrcp.f32 %v231_v54 }
 0x1fe   :  { %361 = vrcp.f32 %v238_v53 }
 0x207   :  { %v360_v55 = vpop.eup %359 }
 0x208   :  { %v241_v56 = vmul.f32 %v360_v55, %v358_v40  ;;  %v362_v57 = vpop.eup %361 }
 0x209   :  { %v242_v58 = vmul.f32 %v362_v57, %v356_v39 }
 0x20a   :  { %245 = vperm.xlu0 %350, %v241_v56  }
 0x20e   :  { %250 = vperm.xlu0 %350, %v242_v58  }
 0x289   :  { %v246_v59 = vpop.permute.xlu0 %245 }
 0x28a   :  { %v253_v60 = vmul.f32 %v246_v59, %v460_v5 }
 0x28c   :  { %v255_v61 = vsel %vm35_vm0, %v253_v60, 0.0 }
 0x28d   :  { %v256_v62 = vrot.slane %v255_v61, 4  ;;  %v251_v63 = vpop.permute.xlu0 %250 }
 0x28e   :  { %v254_v0 = vmul.f32 %v251_v63, %v464_v7 }
 0x28f   :  { %v257_v1 = vadd.f32 %v256_v62, %v255_v61 }
 0x290   :  { %v262_v2 = vsel %vm35_vm0, %v254_v0, 0.0 }
 0x291   :  { %v258_v3 = vrot.slane %v257_v1, 2  ;;  %v263_v4 = vrot.slane %v262_v2, 4 }
 0x293   :  { %v259_v6 = vadd.f32 %v258_v3, %v257_v1  ;;  %v264_v8 = vadd.f32 %v263_v4, %v262_v2 }
 0x295   :  { %v265_v9 = vrot.slane %v264_v8, 2  ;;  %v260_v10 = vrot.slane %v259_v6, 1 }
 0x297   :  { %v266_v11 = vadd.f32 %v265_v9, %v264_v8  ;;  %v261_v5 = vadd.f32 %v260_v10, %v259_v6 }
 0x299   :  { %v267_v12 = vrot.slane %v266_v11, 1 }
 0x29b   :  { %v268_v13 = vadd.f32 %v267_v12, %v266_v11 }
 0x29d   :  { %v272_v14 = vsel %vm271_vm2, %v268_v13, %v261_v5 }
 0x29e   :  { %275 = vst.msk [vmem:[#allocation5] sm:$0x3] %vm274_vm3, %v272_v14 }
 0x29f   :  { %396 = shalt.err (!%p393_p12)
}
 0x2a0   :  { %s397_s17 = scalar_lea.hbm %s505_s3, 32 }
 0x2a1   :  { %p398_p13 = scmp.ne.s32.totalorder %s505_s3, %s397_s17  ;;  %p401_p0 = scmp.lt.u32.totalorder %s397_s17, %s505_s3 }
 0x2a3   :  { %p403_p1 = pnand %p401_p0, %p398_p13 }
 0x2a5   :  { %406 = shalt.err (!%p403_p1)
}
 0x2a6   :  { %285 = dma.vmem_to_hbm [thread:$0]  %s283_s13, 32, %s505_s3, [#allocation4]  }
 0x2a7   :  { %409 = dma.done.wait [#allocation4], 32  }
 0x2a8   :  { %410 = vsyncadd [#allocation4], 4294967264 }
 0x2a9   :  { %289 = vsyncpa [#allocation3], 1 }
 0x2aa   :  { %290 = vsyncpa [#allocation4], 1 }

</bundles_post_ra>
